<compile_context>
chip_gen: v6e
topology: v6e:2x2x1
jax: 0.10.0
libtpu: 0.0.40
codegen_flags: <defaults>
</compile_context>

<pallas_src>
import functools

import jax
import jax.numpy as jnp
from jax.experimental import pallas as pl
from jax.experimental.pallas import tpu as pltpu

NEG_FILL = -9.0e15  # matches torch: -9000000000000000.0


def gat_kernel(item_ref, ent_ref, adj_ref, e1_ref, b_ref, exp_ref, sum_ref, out_ref, *, alpha):
    """One block of TN rows.

    item_ref : (TN, F)     stored dtype
    ent_ref  : (TN, M*F)   stored dtype, lane-dense view of (TN, M, F)
    adj_ref  : (TN, M)     0/1 mask
    e1_ref   : (TN, 1)     f32, precomputed Wh . a1
    b_ref    : (M*F, M)    block-diag summation matrix with wa1 folded in
    exp_ref  : (M, M*F)    0/1 expansion matrix (broadcast p over the F lanes)
    sum_ref  : (M*F, F)    0/1 segmented-sum matrix (reduce over M)
    out_ref  : (TN, F)     f32
    """
    ent = ent_ref[...]                        # (TN, M*F), stored dtype, lane-dense
    cdt = ent.dtype

    # e2[n, m] = sum_f ent[n, m, f] * wa1[f]   -- F-segmented reduction on the MXU.
    e2 = jnp.dot(ent, b_ref[...], preferred_element_type=jnp.float32)       # (TN, M)
    logits = e1_ref[...] + e2                                                # (TN, M) f32
    logits = jnp.where(logits > 0, logits, alpha * logits)                   # LeakyReLU(alpha)
    logits = jnp.where(adj_ref[...] > 0, logits, NEG_FILL)

    # Numerically stable softmax over the neighbor axis (dim=1).  After max-subtraction the
    # denominator is >= 1, so the approximate (EUP) reciprocal is numerically benign.
    m = jnp.max(logits, axis=1, keepdims=True)
    p = jnp.exp(logits - m)                                                  # (TN, M)
    inv = pl.reciprocal(jnp.sum(p, axis=1, keepdims=True), approx=True)      # (TN, 1)

    # weighted[n, f] = sum_m p[n, m] * ent[n, m, f]:
    #   broadcast p over the F lanes via an MXU dot, multiply lane-dense on the VPU,
    #   reduce over M via another MXU dot with f32 accumulation.
    p_exp = jnp.dot(p.astype(cdt), exp_ref[...])                             # (TN, M*F), cdt
    pe = p_exp * ent                                                         # lane-dense VPU
    weighted = jnp.dot(pe, sum_ref[...], preferred_element_type=jnp.float32)  # (TN, F)

    item = item_ref[...].astype(jnp.float32)
    out_ref[...] = (weighted * inv + item).astype(out_ref.dtype)


def _round_up(x, m):
    return ((x + m - 1) // m) * m


def gat_forward(item_embs, entity_embs, adj, W, a, *, alpha, block_n=None, store_dtype=None):
    N, F = item_embs.shape
    _, M, _ = entity_embs.shape
    H = W.shape[1]
    MF = M * F
    out_dtype = item_embs.dtype

    # ---- tiny wrapper-side XLA precompute -------------------------------------------------
    # Fold the attention vector through W:  wa[0] = W @ a[:H], wa[1] = W @ a[H:].
    wa = a.reshape(2, H).astype(jnp.float32) @ W.astype(jnp.float32).T          # (2, F)
    # e1[n] = Wh[n] . a1 = item_embs @ (W @ a[:H])  -- hoisted out of the kernel.
    e1 = item_embs.astype(jnp.float32) @ wa[0][:, None]                          # (N, 1)

    store = jnp.dtype(store_dtype) if store_dtype is not None else jnp.dtype(item_embs.dtype)

    # Constant matrices driving the MXU (all tiny, resident across the grid):
    #   B[m*F+f, m'] = (m == m') * wa1[f]   E[m, m'*F+f] = (m == m')   S[m*F+f, f'] = (f == f')
    eye_m = jnp.eye(M, dtype=jnp.float32)
    b_mat = jnp.kron(eye_m, wa[1][:, None]).astype(store)                        # (M*F, M)
    exp_mat = jnp.kron(eye_m, jnp.ones((1, F), jnp.float32)).astype(store)       # (M, M*F)
    sum_mat = jnp.tile(jnp.eye(F, dtype=jnp.float32), (M, 1)).astype(store)      # (M*F, F)

    item_in = item_embs.astype(store)
    ent_in = entity_embs.reshape(N, MF).astype(store)   # lane-dense slab; reshape is free in HBM
    adj_in = adj.astype(store)                            # 0/1 mask, exact in bf16

    # ---- tile sizing -----------------------------------------------------------------------
    esz_s = store.itemsize
    esz_adj = jnp.dtype(adj_in.dtype).itemsize
    row_align = 16 if esz_s < 4 else 8                    # bf16 packs 16 rows per sublane tile

    io_per_row = F * esz_s + MF * esz_s + M * esz_adj + 4 + F * 4     # item + ent + adj + e1 + out
    inter_per_row = 2 * MF * 4 + 8 * M * 4 + 4 * F * 4                # p_exp/pe (f32 bound) + small temps
    const_bytes = 2 * (MF * M + M * MF + MF * F) * esz_s              # B / E / S buffers

    try:
        vmem_cap = int(pltpu.get_tpu_info().vmem_capacity_bytes)
    except Exception:
        vmem_cap = 64 << 20
    if vmem_cap >= (100 << 20):      # v5e / v6e: 128 MiB VMEM
        budget, limit_cap = 56 << 20, 96 << 20
    else:                            # v7x: 64 MiB VMEM, 2 TensorCores
        budget, limit_cap = 24 << 20, 44 << 20

    max_bn_vmem = max(row_align, (budget - const_bytes) // (2 * io_per_row + inter_per_row))
    max_bn_dma = max(row_align, (12 << 20) // io_per_row)   # per-step DMA in the ~4-12 MiB sweet spot
    bn = min(block_n if block_n is not None else 1 << 30, max_bn_vmem, max_bn_dma, 8192)
    bn = min(bn, -(-N // 8))          # keep >= 8 grid steps when N allows (feeds both v7x TCs)
    bn = max(row_align, (bn // row_align) * row_align)

    n_pad = _round_up(N, bn)
    if n_pad != N:
        pad = n_pad - N
        item_in = jnp.pad(item_in, ((0, pad), (0, 0)))
        ent_in = jnp.pad(ent_in, ((0, pad), (0, 0)))
        adj_in = jnp.pad(adj_in, ((0, pad), (0, 0)))
        e1 = jnp.pad(e1, ((0, pad), (0, 0)))

    needed = 2 * bn * io_per_row + bn * inter_per_row + const_bytes
    vmem_limit = int(min(max(needed + (8 << 20), 32 << 20), limit_cap))

    kernel = functools.partial(gat_kernel, alpha=float(alpha))
    out = pl.pallas_call(
        kernel,
        out_shape=jax.ShapeDtypeStruct((n_pad, F), out_dtype),
        grid_spec=pltpu.PrefetchScalarGridSpec(
            num_scalar_prefetch=0,
            grid=(n_pad // bn,),
            in_specs=[
                pl.BlockSpec((bn, F), lambda i: (i, 0)),
                pl.BlockSpec((bn, MF), lambda i: (i, 0)),
                pl.BlockSpec((bn, M), lambda i: (i, 0)),
                pl.BlockSpec((bn, 1), lambda i: (i, 0)),
                pl.BlockSpec((MF, M), lambda i: (0, 0)),    # resident across the grid
                pl.BlockSpec((M, MF), lambda i: (0, 0)),
                pl.BlockSpec((MF, F), lambda i: (0, 0)),
            ],
            out_specs=pl.BlockSpec((bn, F), lambda i: (i, 0)),
        ),
        compiler_params=pltpu.CompilerParams(
            dimension_semantics=("parallel",),
            vmem_limit_bytes=vmem_limit,
        ),
    )(item_in, ent_in, adj_in, e1, b_mat, exp_mat, sum_mat)
    return out[:N]


def gat_reference(item_embs, entity_embs, adj, W, a, *, alpha):
    """Pure-JAX reference mirroring the PyTorch forward (eval mode, concat=False)."""
    Wh = item_embs @ W                                      # (N, H)
    We = jnp.einsum('nmf,fh->nmh', entity_embs, W)          # (N, M, H)
    a_input = jnp.concatenate(
        [jnp.broadcast_to(Wh[:, None, :], We.shape), We], axis=-1)     # (N, M, 2H)
    e = jnp.squeeze(a_input @ a, axis=2)                    # (N, M)
    e = jnp.where(e > 0, e, alpha * e)
    e = jnp.where(adj > 0, e, NEG_FILL)
    attn = jax.nn.softmax(e, axis=1)
    weighted = jnp.einsum('nm,nmf->nf', attn, entity_embs)
    return weighted + item_embs


def xavier_uniform(key, shape, gain):
    fan_in, fan_out = shape[0], shape[1]
    bound = gain * jnp.sqrt(6.0 / (fan_in + fan_out))
    return jax.random.uniform(key, shape, minval=-bound, maxval=bound, dtype=jnp.float32)


if __name__ == "__main__":
    # Small shapes consistent with the module's forward:
    #   N items (not a multiple of the row tile -> exercises the padded-tail path),
    #   M candidate entities per item; nfeat = F, nhid = H.
    N, M, F, H = 20, 16, 32, 32
    alpha = 0.2  # LeakyReLU negative slope

    key = jax.random.PRNGKey(0)
    k_item, k_ent, k_adj, k_w, k_a = jax.random.split(key, 5)

    item_embs = jax.random.normal(k_item, (N, F), dtype=jnp.float32)
    entity_embs = jax.random.normal(k_ent, (N, M, F), dtype=jnp.float32)
    adj = (jax.random.uniform(k_adj, (N, M)) > 0.4).astype(jnp.float32)
    adj = adj.at[3].set(0.0)  # one all-masked row: -9e15 fill -> uniform attention (matches torch)

    # Deterministic parameter init (xavier_uniform with gain=1.414, as in __init__).
    W = xavier_uniform(k_w, (F, H), gain=1.414)
    a = xavier_uniform(k_a, (2 * H, 1), gain=1.414)
    # TODO(synk): self.fc / self.fc2 are only used in forward_relation, not forward; omitted.

    ref = gat_reference(item_embs, entity_embs, adj, W, a, alpha=alpha)

    # f32 storage path (default).
    out = gat_forward(item_embs, entity_embs, adj, W, a, alpha=alpha)
    out = jax.block_until_ready(out)
    assert out.shape == (N, F)
    assert jnp.allclose(out, ref, atol=5e-3, rtol=5e-3), "f32 kernel mismatch vs reference"

    # bf16 storage of the dominant (N, M*F) entity stream (recommended on HBM-bound v5e/v6e);
    # compare against a bf16-ingesting reference with relaxed tolerances.
    out_bf16 = gat_forward(item_embs, entity_embs, adj, W, a, alpha=alpha,
                           store_dtype=jnp.bfloat16)
    out_bf16 = jax.block_until_ready(out_bf16)
    ref_bf16 = gat_reference(
        item_embs.astype(jnp.bfloat16).astype(jnp.float32),
        entity_embs.astype(jnp.bfloat16).astype(jnp.float32),
        adj, W, a, alpha=alpha)
    assert jnp.allclose(out_bf16, ref_bf16, atol=5e-2, rtol=5e-2), "bf16 kernel mismatch vs reference"

    print("KERNEL_OK")
</pallas_src>

<mosaic_0001>
module attributes {stable_mosaic.version = 11 : i64} {
  func.func @gat_kernel(%arg0: i32, %arg1: memref<8x32xf32, #tpu.memory_space<vmem>>, %arg2: memref<8x512xf32, #tpu.memory_space<vmem>>, %arg3: memref<8x16xf32, #tpu.memory_space<vmem>>, %arg4: memref<8x1xf32, #tpu.memory_space<vmem>>, %arg5: memref<512x16xf32, #tpu.memory_space<vmem>>, %arg6: memref<16x512xf32, #tpu.memory_space<vmem>>, %arg7: memref<512x32xf32, #tpu.memory_space<vmem>>, %arg8: memref<8x32xf32, #tpu.memory_space<vmem>>) attributes {dimension_semantics = [#tpu.dimension_semantics<parallel>], iteration_bounds = array<i64: 3>, scalar_prefetch = 0 : i64, scratch_operands = 0 : i64, tpu.core_type = #tpu.core_type<tc>, window_params = [{transform_indices = @transform_0, window_bounds = array<i64: 8, 32>}, {transform_indices = @transform_1, window_bounds = array<i64: 8, 512>}, {transform_indices = @transform_2, window_bounds = array<i64: 8, 16>}, {transform_indices = @transform_3, window_bounds = array<i64: 8, 1>}, {pipeline_mode = #tpu.pipeline_mode<synchronous>, transform_indices = @transform_4, window_bounds = array<i64: 512, 16>}, {pipeline_mode = #tpu.pipeline_mode<synchronous>, transform_indices = @transform_5, window_bounds = array<i64: 16, 512>}, {pipeline_mode = #tpu.pipeline_mode<synchronous>, transform_indices = @transform_6, window_bounds = array<i64: 512, 32>}, {transform_indices = @transform_7, window_bounds = array<i64: 8, 32>}]} {
    %c0 = arith.constant 0 : index
    %c0_0 = arith.constant 0 : index
    %0 = vector.load %arg2[%c0, %c0_0] : memref<8x512xf32, #tpu.memory_space<vmem>>, vector<8x512xf32>
    %c0_1 = arith.constant 0 : index
    %c0_2 = arith.constant 0 : index
    %1 = vector.load %arg5[%c0_1, %c0_2] : memref<512x16xf32, #tpu.memory_space<vmem>>, vector<512x16xf32>
    %cst = arith.constant dense<0.000000e+00> : vector<8x16xf32>
    %2 = tpu.matmul %0, %1, %cst {dimension_numbers = #tpu.dot_dimension_numbers<[1], [0], [0], [1], [0, 0, 1, 1], [], []>} : vector<8x512xf32>, vector<512x16xf32>, vector<8x16xf32> -> vector<8x16xf32>
    %c0_3 = arith.constant 0 : index
    %c0_4 = arith.constant 0 : index
    %3 = vector.load %arg4[%c0_3, %c0_4] : memref<8x1xf32, #tpu.memory_space<vmem>>, vector<8x1xf32>
    %4 = vector.broadcast %3 : vector<8x1xf32> to vector<8x16xf32>
    %5 = arith.addf %4, %2 : vector<8x16xf32>
    %cst_5 = arith.constant 0.000000e+00 : f32
    %6 = vector.broadcast %cst_5 : f32 to vector<8x16xf32>
    %7 = arith.cmpf ogt, %5, %6 : vector<8x16xf32>
    %cst_6 = arith.constant 2.000000e-01 : f32
    %8 = vector.broadcast %cst_6 : f32 to vector<8x16xf32>
    %9 = arith.mulf %8, %5 : vector<8x16xf32>
    %10 = arith.select %7, %5, %9 : vector<8x16xi1>, vector<8x16xf32>
    %c0_7 = arith.constant 0 : index
    %c0_8 = arith.constant 0 : index
    %11 = vector.load %arg3[%c0_7, %c0_8] : memref<8x16xf32, #tpu.memory_space<vmem>>, vector<8x16xf32>
    %cst_9 = arith.constant 0.000000e+00 : f32
    %12 = vector.broadcast %cst_9 : f32 to vector<8x16xf32>
    %13 = arith.cmpf ogt, %11, %12 : vector<8x16xf32>
    %cst_10 = arith.constant -9.000000e+15 : f32
    %14 = vector.broadcast %cst_10 : f32 to vector<8x16xf32>
    %15 = arith.select %13, %10, %14 : vector<8x16xi1>, vector<8x16xf32>
    %cst_11 = arith.constant dense<0xFF800000> : vector<8xf32>
    %16 = vector.multi_reduction <maximumf>, %15, %cst_11 [1] : vector<8x16xf32> to vector<8xf32>
    %17 = vector.shape_cast %16 : vector<8xf32> to vector<8x1xf32>
    %18 = vector.broadcast %17 : vector<8x1xf32> to vector<8x16xf32>
    %19 = arith.subf %15, %18 : vector<8x16xf32>
    %20 = math.exp %19 : vector<8x16xf32>
    %cst_12 = arith.constant dense<0.000000e+00> : vector<8xf32>
    %21 = vector.multi_reduction <add>, %20, %cst_12 [1] : vector<8x16xf32> to vector<8xf32>
    %22 = vector.shape_cast %21 : vector<8xf32> to vector<8x1xf32>
    %23 = tpu.reciprocal %22 {approx = true} : vector<8x1xf32> -> vector<8x1xf32>
    %c0_13 = arith.constant 0 : index
    %c0_14 = arith.constant 0 : index
    %24 = vector.load %arg6[%c0_13, %c0_14] : memref<16x512xf32, #tpu.memory_space<vmem>>, vector<16x512xf32>
    %cst_15 = arith.constant dense<0.000000e+00> : vector<8x512xf32>
    %25 = tpu.matmul %20, %24, %cst_15 {dimension_numbers = #tpu.dot_dimension_numbers<[1], [0], [0], [1], [0, 0, 1, 1], [], []>} : vector<8x16xf32>, vector<16x512xf32>, vector<8x512xf32> -> vector<8x512xf32>
    %26 = arith.mulf %25, %0 : vector<8x512xf32>
    %c0_16 = arith.constant 0 : index
    %c0_17 = arith.constant 0 : index
    %27 = vector.load %arg7[%c0_16, %c0_17] : memref<512x32xf32, #tpu.memory_space<vmem>>, vector<512x32xf32>
    %cst_18 = arith.constant dense<0.000000e+00> : vector<8x32xf32>
    %28 = tpu.matmul %26, %27, %cst_18 {dimension_numbers = #tpu.dot_dimension_numbers<[1], [0], [0], [1], [0, 0, 1, 1], [], []>} : vector<8x512xf32>, vector<512x32xf32>, vector<8x32xf32> -> vector<8x32xf32>
    %c0_19 = arith.constant 0 : index
    %c0_20 = arith.constant 0 : index
    %29 = vector.load %arg1[%c0_19, %c0_20] : memref<8x32xf32, #tpu.memory_space<vmem>>, vector<8x32xf32>
    %30 = vector.broadcast %23 : vector<8x1xf32> to vector<8x32xf32>
    %31 = arith.mulf %28, %30 : vector<8x32xf32>
    %32 = arith.addf %31, %29 : vector<8x32xf32>
    %c0_21 = arith.constant 0 : index
    %c0_22 = arith.constant 0 : index
    %33 = vector.load %arg8[%c0_21, %c0_22] : memref<8x32xf32, #tpu.memory_space<vmem>>, vector<8x32xf32>
    tpu.vector_store %arg8[%c0_21, %c0_22], %32 {strides = array<i32>} : memref<8x32xf32, #tpu.memory_space<vmem>>, vector<8x32xf32>,
    return
  }
  func.func @transform_0(%arg0: i32) -> (i32, i32) {
    %c0_i32 = arith.constant 0 : i32
    %c0_i32_0 = arith.constant 0 : i32
    return %arg0, %c0_i32 : i32, i32
  }
  func.func @transform_1(%arg0: i32) -> (i32, i32) {
    %c0_i32 = arith.constant 0 : i32
    %c0_i32_0 = arith.constant 0 : i32
    return %arg0, %c0_i32 : i32, i32
  }
  func.func @transform_2(%arg0: i32) -> (i32, i32) {
    %c0_i32 = arith.constant 0 : i32
    %c0_i32_0 = arith.constant 0 : i32
    return %arg0, %c0_i32 : i32, i32
  }
  func.func @transform_3(%arg0: i32) -> (i32, i32) {
    %c0_i32 = arith.constant 0 : i32
    %c0_i32_0 = arith.constant 0 : i32
    return %arg0, %c0_i32 : i32, i32
  }
  func.func @transform_4(%arg0: i32) -> (i32, i32) {
    %c0_i32 = arith.constant 0 : i32
    %c0_i32_0 = arith.constant 0 : i32
    %c0_i32_1 = arith.constant 0 : i32
    return %c0_i32, %c0_i32_0 : i32, i32
  }
  func.func @transform_5(%arg0: i32) -> (i32, i32) {
    %c0_i32 = arith.constant 0 : i32
    %c0_i32_0 = arith.constant 0 : i32
    %c0_i32_1 = arith.constant 0 : i32
    return %c0_i32, %c0_i32_0 : i32, i32
  }
  func.func @transform_6(%arg0: i32) -> (i32, i32) {
    %c0_i32 = arith.constant 0 : i32
    %c0_i32_0 = arith.constant 0 : i32
    %c0_i32_1 = arith.constant 0 : i32
    return %c0_i32, %c0_i32_0 : i32, i32
  }
  func.func @transform_7(%arg0: i32) -> (i32, i32) {
    %c0_i32 = arith.constant 0 : i32
    %c0_i32_0 = arith.constant 0 : i32
    return %arg0, %c0_i32 : i32, i32
  }
}

</mosaic_0001>

<bundles_post_ra>
// kernel: tpu_custom_call.1
= control target key start
LH: loop header
LB: loop body
LE: loop exit
PB: predicated region body
PF: predicated region fallthrough
CT: control target
= control target key end

     0   :  { %12 = vsyncpa [#allocation3], 0  ;;  %s1878_s0 = inlined_call_operand.vmem [shape: f32[24,32], index: 0, kind: input, shape index: {}]   ;;  %s1879_s1 = inlined_call_operand.vmem [shape: f32[24,512], index: 1, kind: input, shape index: {}]   ;;  %s1880_s2 = inlined_call_operand.vmem [shape: f32[24,16], index: 2, kind: input, shape index: {}]   ;;  %s1881_s3 = inlined_call_operand.vmem [shape: f32[24,1], index: 3, kind: input, shape index: {}]   ;;  %s1882_s4 = inlined_call_operand.vmem [shape: f32[512,16], index: 4, kind: input, shape index: {}]   ;;  %s1883_s5 = inlined_call_operand.vmem [shape: f32[16,512], index: 5, kind: input, shape index: {}]   ;;  %s1884_s6 = inlined_call_operand.vmem [shape: f32[512,32], index: 6, kind: input, shape index: {}]   ;;  %s1885_s7 = inlined_call_operand.hbm [shape: f32[24,32], index: 7, kind: output, shape index: {}]  }
   0x1   :  { %14 = vsyncpa [#allocation3 + $0x1], 0  ;;  %s1343_s24 = smov 0   ;;  %s1345_s25 = smov 0  }
   0x2   :  { %s1347_s26 = smov 0   ;;  %s1349_s27 = smov 0  }
   0x3 LB: > { %s1364_s28 = sadd.s32 4294967295, %s1298_s27   ;;  %s1035_s29 = sadd.s32 4294967294, %s1298_s27   ;;  %s1298_s27 = sphi %s1349_s27, %s1891_s27   ;;  %s1294_s26 = sphi %s1347_s26, %s1890_s26   ;;  %s1290_s25 = sphi %s1345_s25, %s1889_s25   ;;  %s1286_s24 = sphi %s1343_s24, %s1888_s24  }
   0x4   : > { %s1368_s30 = sadd.s32 1, %s1298_s27   ;;  %s194_s8 = sadd.s32 1, %s1294_s26 }
   0x5   : > { %s191_s9 = ssub.s32 %s1298_s27, %s1368_s30  ;;  %p204_p0 = scmp.ne.s32.totalorder %s1294_s26, %s1290_s25 }
   0x6   : > { %p192_p1 = scmp.eq.s32.totalorder %s191_s9, 0  ;;  %p205_p2 = scmp.eq.s32.totalorder %s1364_s28, 2 }
   0x7   : > { %p210_p3 = scmp.ne.s32.totalorder %s1290_s25, %s1286_s24  ;;  %p211_p4 = scmp.eq.s32.totalorder %s1035_s29, 2 }
   0x8   : > { %s1379_s10 = scalar_select %p192_p1, %s1294_s26, %s194_s8  }
   0x9   : > { %p1381_p5 = por %p205_p2, %p204_p0  ;;  %p1385_p6 = por %p211_p4, %p210_p3 }
   0xa   : > { %p1038_p7 = scmp.ge.s32.totalorder %s1298_s27, 1  ;;  %p267_p8 = scmp.lt.s32.totalorder %s1298_s27, 4 }
   0xc   : > { %p268_p9 = pnand %p1038_p7, %p267_p8 }
   0xd   : > { %p311_p10 = scmp.lt.s32.totalorder (!%p268_p9), %s1364_s28, 2  ;;  %s1048_s23 = sshll.u32 (!%p268_p9), %s1364_s28, 7 }
   0xe   : > { %271 = sbr.rel (%p268_p9) target bundleno = 831 (0x33f), region = 48  ;;  %s938_s14 = scalar_lea.hbm (!%p268_p9), %s1885_s7, %s1048_s23 }
   0xf   : > { %s1302_s18 = smov (!%p268_p9), [#allocation2]  }
  0x10   : > { %s1242_s20 = sshll.u32 (!%p268_p9), %s1302_s18, 4  ;;  %s1243_s20 = int_to_ptr.vmem [resolvable:$false] %s1242_s20 }
  0x13   : > { %v363_v0 = vld [vmem:[%s1882_s4 + $0xf8] sm:$0xff]  ;;  %v362_v4 = vld [vmem:[%s1882_s4 + $0xf0] sm:$0xff]  ;;  %v361_v8 = vld [vmem:[%s1882_s4 + $0xe8] sm:$0xff]  ;;  %s1527_s17 = scalar_select %p311_p10, %s1364_s28, 2  ;;  %vm549_vm2 = vcmask 130048   ;;  %vm924_vm3 = vcmask 261120  }
  0x14   : > { %v395_v1 = vld [vmem:[%s1882_s4 + $0x1f8] sm:$0xff]  ;;  %1052 = vmatprep.subr.mxu0 %v363_v0  ;;  %v394_v5 = vld [vmem:[%s1882_s4 + $0x1f0] sm:$0xff]  ;;  %v393_v9 = vld [vmem:[%s1882_s4 + $0x1e8] sm:$0xff]  ;;  %s1244_s28 = scalar_lea.vmem %s1243_s20, 256 }
  0x15   : > { %v347_v2 = vld [vmem:[%s1882_s4 + $0x78] sm:$0xff]  ;;  %1087 = vmatprep.subr.mxu1 %v395_v1  ;;  %v346_v6 = vld [vmem:[%s1882_s4 + $0x70] sm:$0xff]  ;;  %v345_v10 = vld [vmem:[%s1882_s4 + $0x68] sm:$0xff]  ;;  %s1051_s21 = sshll.u32 %s1527_s17, 5  ;;  %s1582_s15 = sshll.u32 %s1527_s17, 3 }
  0x16   : > { %v379_v3 = vld [vmem:[%s1882_s4 + $0x178] sm:$0xff]  ;;  %1053 = vmatpush3.msra.mxu0 %v347_v2  ;;  %v378_v7 = vld [vmem:[%s1882_s4 + $0x170] sm:$0xff]  ;;  %v377_v11 = vld [vmem:[%s1882_s4 + $0x168] sm:$0xff]  ;;  %s319_s29 = scalar_lea.vmem %s1879_s1, %s1051_s21  ;;  %s327_s13 = scalar_lea.vmem %s1881_s3, %s1582_s15 }
  0x17   : > { %1088 = vmatpush3.msra.mxu1 %v379_v3  ;;  %1054 = vmatprep.subr.mxu0 %v362_v4  ;;  %v360_v12 = vld [vmem:[%s1882_s4 + $0xe0] sm:$0xff]  ;;  %v359_v16 = vld [vmem:[%s1882_s4 + $0xd8] sm:$0xff]  ;;  %v358_v20 = vld [vmem:[%s1882_s4 + $0xd0] sm:$0xff]  ;;  %s323_s16 = scalar_lea.vmem %s1880_s2, %s1582_s15  ;;  %s308_s21 = sand.u32 1, %s1290_s25  }
  0x18   : > { %1089 = vmatprep.subr.mxu1 %v394_v5  ;;  %1055 = vmatpush3.msra.mxu0 %v346_v6  ;;  %v392_v13 = vld [vmem:[%s1882_s4 + $0x1e0] sm:$0xff]  ;;  %v391_v17 = vld [vmem:[%s1882_s4 + $0x1d8] sm:$0xff]  ;;  %v390_v21 = vld [vmem:[%s1882_s4 + $0x1d0] sm:$0xff]  ;;  %v1300_v5 = vmov 0   ;;  %s1039_s19 = sshll.u32 %s308_s21, 3  ;;  %s314_s17 = scalar_lea.vmem %s1878_s0, %s1582_s15 }
  0x19   : > { %1090 = vmatpush3.msra.mxu1 %v378_v7  ;;  %1056 = vmatprep.subr.mxu0 %v361_v8  ;;  %v344_v14 = vld [vmem:[%s1882_s4 + $0x60] sm:$0xff]  ;;  %v343_v18 = vld [vmem:[%s1882_s4 + $0x58] sm:$0xff]  ;;  %v342_v22 = vld [vmem:[%s1882_s4 + $0x50] sm:$0xff]  ;;  %s310_s8 = scalar_lea.vmem [#allocation2], %s1039_s19 }
  0x1a   : > { %1091 = vmatprep.subr.mxu1 %v393_v9  ;;  %v376_v15 = vld [vmem:[%s1882_s4 + $0x160] sm:$0xff]  ;;  %1057 = vmatpush3.msra.mxu0 %v345_v10  ;;  %v375_v19 = vld [vmem:[%s1882_s4 + $0x158] sm:$0xff]  ;;  %v374_v23 = vld [vmem:[%s1882_s4 + $0x150] sm:$0xff]  ;;  %s940_s9 = sshll.u32 %s310_s8, 4  ;;  %s941_s9 = int_to_ptr.vmem [resolvable:$true] %s940_s9 }
  0x1b   : > { %1092 = vmatpush3.msra.mxu1 %v377_v11  ;;  %1058 = vmatprep.subr.mxu0 %v360_v12  ;;  %v357_v24 = vld [vmem:[%s1882_s4 + $0xc8] sm:$0xff]  ;;  %v356_v28 = vld [vmem:[%s1882_s4 + $0xc0] sm:$0xff]  ;;  %v355_v32 = vld [vmem:[%s1882_s4 + $0xb8] sm:$0xff]  ;;  %s1238_s15 = scalar_lea.vmem %s941_s9, 128  ;;  %p1245_p0 = scmp.lt.s32.totalorder %s941_s9, %s1243_s20 }
  0x1c   : > { %1093 = vmatprep.subr.mxu1 %v392_v13  ;;  %1059 = vmatpush3.msra.mxu0 %v344_v14  ;;  %v389_v25 = vld [vmem:[%s1882_s4 + $0x1c8] sm:$0xff]  ;;  %v388_v29 = vld [vmem:[%s1882_s4 + $0x1c0] sm:$0xff]  ;;  %v387_v33 = vld [vmem:[%s1882_s4 + $0x1b8] sm:$0xff]  ;;  %p1239_p11 = scmp.ne.s32.totalorder %s941_s9, %s1238_s15  ;;  %p1246_p1 = scmp.lt.s32.totalorder %s1244_s28, %s1238_s15 }
  0x1d   : > { %1094 = vmatpush3.msra.mxu1 %v376_v15  ;;  %1060 = vmatprep.subr.mxu0 %v359_v16  ;;  %v341_v26 = vld [vmem:[%s1882_s4 + $0x48] sm:$0xff]  ;;  %v340_v30 = vld [vmem:[%s1882_s4 + $0x40] sm:$0xff]  ;;  %v339_v34 = vld [vmem:[%s1882_s4 + $0x38] sm:$0xff] }
  0x1e   : > { %1095 = vmatprep.subr.mxu1 %v391_v17  ;;  %1061 = vmatpush3.msra.mxu0 %v343_v18  ;;  %v373_v27 = vld [vmem:[%s1882_s4 + $0x148] sm:$0xff]  ;;  %v372_v31 = vld [vmem:[%s1882_s4 + $0x140] sm:$0xff]  ;;  %v371_v35 = vld [vmem:[%s1882_s4 + $0x138] sm:$0xff]  ;;  %p1240_p12 = pnand %p1239_p11, %p1381_p5  ;;  %p1247_p2 = por %p1246_p1, %p1245_p0 }
  0x1f   : > { %1096 = vmatpush3.msra.mxu1 %v375_v19  ;;  %1062 = vmatprep.subr.mxu0 %v358_v20  ;;  %v354_v36 = vld [vmem:[%s1882_s4 + $0xb0] sm:$0xff]  ;;  %v353_v40 = vld [vmem:[%s1882_s4 + $0xa8] sm:$0xff]  ;;  %v352_v44 = vld [vmem:[%s1882_s4 + $0xa0] sm:$0xff] }
  0x20   : > { %1097 = vmatprep.subr.mxu1 %v390_v21  ;;  %1063 = vmatpush3.msra.mxu0 %v342_v22  ;;  %v386_v37 = vld [vmem:[%s1882_s4 + $0x1b0] sm:$0xff]  ;;  %v385_v41 = vld [vmem:[%s1882_s4 + $0x1a8] sm:$0xff]  ;;  %v384_v45 = vld [vmem:[%s1882_s4 + $0x1a0] sm:$0xff]  ;;  %p1241_p13 = pneg %p1240_p12 }
  0x21   : > { %1098 = vmatpush3.msra.mxu1 %v374_v23  ;;  %1064 = vmatprep.subr.mxu0 %v357_v24  ;;  %v338_v38 = vld [vmem:[%s1882_s4 + $0x30] sm:$0xff]  ;;  %v337_v42 = vld [vmem:[%s1882_s4 + $0x28] sm:$0xff]  ;;  %v336_v46 = vld [vmem:[%s1882_s4 + $0x20] sm:$0xff] }
  0x22   : > { %1099 = vmatprep.subr.mxu1 %v389_v25  ;;  %1065 = vmatpush3.msra.mxu0 %v341_v26  ;;  %v370_v39 = vld [vmem:[%s1882_s4 + $0x130] sm:$0xff]  ;;  %v369_v43 = vld [vmem:[%s1882_s4 + $0x128] sm:$0xff]  ;;  %v368_v47 = vld [vmem:[%s1882_s4 + $0x120] sm:$0xff]  ;;  %p1248_p3 = pnand %p1247_p2, %p1241_p13 }
  0x23   : > { %1100 = vmatpush3.msra.mxu1 %v373_v27  ;;  %1066 = vmatprep.subr.mxu0 %v356_v28  ;;  %v351_v48 = vld [vmem:[%s1882_s4 + $0x98] sm:$0xff]  ;;  %v350_v52 = vld [vmem:[%s1882_s4 + $0x90] sm:$0xff]  ;;  %v349_v56 = vld [vmem:[%s1882_s4 + $0x88] sm:$0xff]  ;;  %v1301_v28 = vmov 0.0  }
  0x24   : > { %1101 = vmatprep.subr.mxu1 %v388_v29  ;;  %1067 = vmatpush3.msra.mxu0 %v340_v30  ;;  %v383_v49 = vld [vmem:[%s1882_s4 + $0x198] sm:$0xff]  ;;  %v382_v53 = vld [vmem:[%s1882_s4 + $0x190] sm:$0xff]  ;;  %v381_v57 = vld [vmem:[%s1882_s4 + $0x188] sm:$0xff] }
  0x25   : > { %1102 = vmatpush3.msra.mxu1 %v372_v31  ;;  %1068 = vmatprep.subr.mxu0 %v355_v32  ;;  %v335_v50 = vld [vmem:[%s1882_s4 + $0x18] sm:$0xff]  ;;  %v334_v54 = vld [vmem:[%s1882_s4 + $0x10] sm:$0xff]  ;;  %v333_v58 = vld [vmem:[%s1882_s4 + $0x8] sm:$0xff] }
  0x26   : > { %1103 = vmatprep.subr.mxu1 %v387_v33  ;;  %1069 = vmatpush3.msra.mxu0 %v339_v34  ;;  %v367_v51 = vld [vmem:[%s1882_s4 + $0x118] sm:$0xff]  ;;  %v366_v55 = vld [vmem:[%s1882_s4 + $0x110] sm:$0xff]  ;;  %v365_v59 = vld [vmem:[%s1882_s4 + $0x108] sm:$0xff] }
  0x27   : > { %1104 = vmatpush3.msra.mxu1 %v371_v35  ;;  %1070 = vmatprep.subr.mxu0 %v354_v36  ;;  %v348_v60 = vld [vmem:[%s1882_s4 + $0x80] sm:$0xff]  ;;  %v1593_v63 = vld [vmem:[%s319_s29 + $0x8] sm:$0xff]  ;;  %v1598_v1 = vld [vmem:[%s319_s29 + $0x18] sm:$0xff] }
  0x28   : > { %1105 = vmatprep.subr.mxu1 %v386_v37  ;;  %1071 = vmatpush3.msra.mxu0 %v338_v38  ;;  %v380_v61 = vld [vmem:[%s1882_s4 + $0x180] sm:$0xff]  ;;  %v1606_v3 = vld [vmem:[%s319_s29 + $0x10] sm:$0xff]  ;;  %v565_v20 = vld [vmem:[%s1883_s5 + $0x28] sm:$0xff] }
  0x29   : > { %1106 = vmatpush3.msra.mxu1 %v370_v39  ;;  %1072 = vmatprep.subr.mxu0 %v353_v40  ;;  %v332_v62 = vld [vmem:[%s1882_s4] sm:$0xff]  ;;  %v567_v21 = vld [vmem:[%s1883_s5 + $0x38] sm:$0xff]  ;;  %v566_v23 = vld [vmem:[%s1883_s5 + $0x30] sm:$0xff] }
  0x2a   : > { %1107 = vmatprep.subr.mxu1 %v385_v41  ;;  %1073 = vmatpush3.msra.mxu0 %v337_v42  ;;  %v364_v0 = vld [vmem:[%s1882_s4 + $0x100] sm:$0xff]  ;;  %v561_v24 = vld [vmem:[%s1883_s5 + $0x8] sm:$0xff]  ;;  %v563_v25 = vld [vmem:[%s1883_s5 + $0x18] sm:$0xff] }
  0x2b   : > { %1108 = vmatpush3.msra.mxu1 %v369_v43  ;;  %1074 = vmatprep.subr.mxu0 %v352_v44  ;;  %v1604_v2 = vld [vmem:[%s319_s29] sm:$0xff]  ;;  %v562_v27 = vld [vmem:[%s1883_s5 + $0x10] sm:$0xff]  ;;  %v748_v34 = vld [vmem:[%s1884_s6 + $0xf8] sm:$0xff] }
  0x2c   : > { %1109 = vmatprep.subr.mxu1 %v384_v45  ;;  %1075 = vmatpush3.msra.mxu0 %v336_v46  ;;  %v536_v4 = vld [vmem:[%s327_s13] sm:$0xff]  ;;  %v780_v35 = vld [vmem:[%s1884_s6 + $0x1f8] sm:$0xff]  ;;  %v747_v38 = vld [vmem:[%s1884_s6 + $0xf0] sm:$0xff] }
  0x2d   : > { %1110 = vmatpush3.msra.mxu1 %v368_v47  ;;  %1076 = vmatprep.subr.mxu0 %v351_v48  ;;  %v546_v14 = vld [vmem:[%s323_s16] sm:$0xff]  ;;  %v732_v36 = vld [vmem:[%s1884_s6 + $0x78] sm:$0xff]  ;;  %v779_v39 = vld [vmem:[%s1884_s6 + $0x1f0] sm:$0xff]  ;;  %s927_s16 = scalar_lea.sflag [#allocation3], %s308_s21 }
  0x2e   : > { %1111 = vmatprep.subr.mxu1 %v383_v49  ;;  %1077 = vmatpush3.msra.mxu0 %v335_v50  ;;  %vm547_vm1 = vcmp.gt.f32.partialorder %v546_v14, 0.0  ;;  %v564_v22 = vld [vmem:[%s1883_s5 + $0x20] sm:$0xff]  ;;  %v764_v37 = vld [vmem:[%s1884_s6 + $0x178] sm:$0xff]  ;;  %v731_v40 = vld [vmem:[%s1884_s6 + $0x70] sm:$0xff] }
  0x2f   : > { %1112 = vmatpush3.msra.mxu1 %v367_v51  ;;  %1078 = vmatprep.subr.mxu0 %v350_v52  ;;  %v560_v26 = vld [vmem:[%s1883_s5] sm:$0xff]  ;;  %v763_v41 = vld [vmem:[%s1884_s6 + $0x170] sm:$0xff]  ;;  %v746_v42 = vld [vmem:[%s1884_s6 + $0xe8] sm:$0xff] }
  0x30   : > { %1113 = vmatprep.subr.mxu1 %v382_v53  ;;  %1079 = vmatpush3.msra.mxu0 %v334_v54  ;;  %v778_v43 = vld [vmem:[%s1884_s6 + $0x1e8] sm:$0xff]  ;;  %v745_v46 = vld [vmem:[%s1884_s6 + $0xe0] sm:$0xff]  ;;  %v744_v50 = vld [vmem:[%s1884_s6 + $0xd8] sm:$0xff] }
  0x31   : > { %1114 = vmatpush3.msra.mxu1 %v366_v55  ;;  %1080 = vmatprep.subr.mxu0 %v349_v56  ;;  %v730_v44 = vld [vmem:[%s1884_s6 + $0x68] sm:$0xff]  ;;  %v777_v47 = vld [vmem:[%s1884_s6 + $0x1e0] sm:$0xff]  ;;  %v776_v51 = vld [vmem:[%s1884_s6 + $0x1d8] sm:$0xff] }
  0x32   : > { %1115 = vmatprep.subr.mxu1 %v381_v57  ;;  %1081 = vmatpush3.msra.mxu0 %v333_v58  ;;  %v762_v45 = vld [vmem:[%s1884_s6 + $0x168] sm:$0xff]  ;;  %v729_v48 = vld [vmem:[%s1884_s6 + $0x60] sm:$0xff]  ;;  %v728_v52 = vld [vmem:[%s1884_s6 + $0x58] sm:$0xff] }
  0x33   : > { %1116 = vmatpush3.msra.mxu1 %v365_v59  ;;  %1082 = vmatprep.subr.mxu0 %v348_v60  ;;  %v761_v49 = vld [vmem:[%s1884_s6 + $0x160] sm:$0xff]  ;;  %v760_v53 = vld [vmem:[%s1884_s6 + $0x158] sm:$0xff]  ;;  %v743_v54 = vld [vmem:[%s1884_s6 + $0xd0] sm:$0xff] }
  0x34   : > { %1117 = vmatprep.subr.mxu1 %v380_v61  ;;  %1083 = vmatpush3.msra.mxu0 %v332_v62  ;;  %v775_v55 = vld [vmem:[%s1884_s6 + $0x1d0] sm:$0xff]  ;;  %v742_v58 = vld [vmem:[%s1884_s6 + $0xc8] sm:$0xff]  ;;  %v741_v62 = vld [vmem:[%s1884_s6 + $0xc0] sm:$0xff] }
  0x35   : > { %460 = vmatprep.mubr.f32.mxu0 %v1593_v63  ;;  %1118 = vmatpush3.msra.mxu1 %v364_v0  ;;  %v727_v56 = vld [vmem:[%s1884_s6 + $0x50] sm:$0xff]  ;;  %v774_v59 = vld [vmem:[%s1884_s6 + $0x1c8] sm:$0xff]  ;;  %v773_v0 = vld [vmem:[%s1884_s6 + $0x1c0] sm:$0xff] }
  0x36   : > { %530 = vmatprep.mubr.f32.mxu1 %v1598_v1  ;;  %461 = vmatmul.mubr.f32.vlgmr.msra.gmra.mxu0 %v1604_v2  ;;  %v759_v57 = vld [vmem:[%s1884_s6 + $0x150] sm:$0xff]  ;;  %v726_v60 = vld [vmem:[%s1884_s6 + $0x48] sm:$0xff] }
  0x37   : > { %531 = vmatmul.mubr.f32.vlgmr.msra.gmra.mxu1 %v1606_v3  ;;  %1233 = vset.pattern.permute.xlu0 %v1300_v5  ;;  %v758_v61 = vld [vmem:[%s1884_s6 + $0x148] sm:$0xff]  ;;  %v757_v5 = vld [vmem:[%s1884_s6 + $0x140] sm:$0xff] }
  0x38   : > { %539 = vperm.xlu0 %1233, %v536_v4   ;;  %599 = vmatprep.subr.mxu0 %v565_v20  ;;  %v725_v4 = vld [vmem:[%s1884_s6 + $0x40] sm:$0xff]  ;;  %v738_v14 = vld [vmem:[%s1884_s6 + $0xa8] sm:$0xff] }
  0x39   : > { %670 = vmatprep.subr.mxu1 %v567_v21  ;;  %600 = vmatpush1.msra.mxu0 %v564_v22  ;;  %v721_v20 = vld [vmem:[%s1884_s6 + $0x20] sm:$0xff]  ;;  %v736_v22 = vld [vmem:[%s1884_s6 + $0x98] sm:$0xff] }
  0x3a   : > { %671 = vmatpush1.msra.mxu1 %v566_v23  ;;  %601 = vmatprep.subr.mxu0 %v561_v24  ;;  %v753_v21 = vld [vmem:[%s1884_s6 + $0x120] sm:$0xff]  ;;  %v768_v23 = vld [vmem:[%s1884_s6 + $0x198] sm:$0xff] }
  0x3b   : > { %672 = vmatprep.subr.mxu1 %v563_v25  ;;  %602 = vmatpush1.msra.mxu0 %v560_v26  ;;  %v720_v24 = vld [vmem:[%s1884_s6 + $0x18] sm:$0xff]  ;;  %v735_v26 = vld [vmem:[%s1884_s6 + $0x90] sm:$0xff] }
  0x3c   : > { %673 = vmatpush1.msra.mxu1 %v562_v27  ;;  %635 = vmatprep.mubr.f32.mxu0 %v1301_v28  ;;  %v752_v25 = vld [vmem:[%s1884_s6 + $0x118] sm:$0xff]  ;;  %v767_v27 = vld [vmem:[%s1884_s6 + $0x190] sm:$0xff] }
  0x3d   : > { %706 = vmatprep.mubr.f32.mxu1 %v1301_v28  ;;  %1122 = vmatprep.subr.mxu0 %v748_v34  ;;  %v719_v28 = vld [vmem:[%s1884_s6 + $0x10] sm:$0xff]  ;;  %v733_v34 = vld [vmem:[%s1884_s6 + $0x80] sm:$0xff] }
  0x3e   : > { %1157 = vmatprep.subr.mxu1 %v780_v35  ;;  %v765_v35 = vld [vmem:[%s1884_s6 + $0x180] sm:$0xff] }
  0xb3   : > { %v540_v12 = vpop.permute.xlu0 %539 }
  0xf6   : > { %v1084_v6 = vpop.f32.mrf.mxu0 }
  0xf7   : > { %v1119_v7 = vpop.f32.mrf.mxu1 }
  0xf8   : > { %v1085_v8 = vpop.f32.mrf.mxu0 }
  0xf9   : > { %v1120_v9 = vpop.f32.mrf.mxu1  ;;  %v1086_v10 = vadd.f32 %v1085_v8, %v1084_v6  ;;  %v740_v6 = vld [vmem:[%s1884_s6 + $0xb8] sm:$0xff] }
  0xfa   : > { %v1121_v11 = vadd.f32 %v1120_v9, %v1119_v7  ;;  %v772_v7 = vld [vmem:[%s1884_s6 + $0x1b8] sm:$0xff] }
  0xfb   : > { %v724_v8 = vld [vmem:[%s1884_s6 + $0x38] sm:$0xff] }
  0xfc   : > { %v533_v13 = vadd.f32 %v1121_v11, %v1086_v10  ;;  %v756_v9 = vld [vmem:[%s1884_s6 + $0x138] sm:$0xff]  ;;  %v739_v10 = vld [vmem:[%s1884_s6 + $0xb0] sm:$0xff] }
  0xfd   : > { %v771_v11 = vld [vmem:[%s1884_s6 + $0x1b0] sm:$0xff] }
  0xfe   : > { %v542_v15 = vadd.f32 %v540_v12, %v533_v13  ;;  %v723_v12 = vld [vmem:[%s1884_s6 + $0x30] sm:$0xff] }
  0xff   : > { %v755_v13 = vld [vmem:[%s1884_s6 + $0x130] sm:$0xff] }
 0x100   : > { %v544_v16 = vmul.f32 0.2, %v542_v15  ;;  %vm543_vm0 = vcmp.gt.f32.partialorder %v542_v15, 0.0 }
 0x102   : > { %v545_v17 = vsel %vm543_vm0, %v542_v15, %v544_v16  ;;  %v770_v15 = vld [vmem:[%s1884_s6 + $0x1a8] sm:$0xff] }
 0x103   : > { %v548_v18 = vsel %vm547_vm1, %v545_v17, -9e+15  ;;  %v722_v16 = vld [vmem:[%s1884_s6 + $0x28] sm:$0xff] }
 0x104   : > { %v550_v19 = vsel %vm549_vm2, %v548_v18, -inf  ;;  %v754_v17 = vld [vmem:[%s1884_s6 + $0x128] sm:$0xff] }
 0x105   : > { %551 = vmax.xlane.f32.xlu0 %v550_v19  ;;  %v769_v19 = vld [vmem:[%s1884_s6 + $0x1a0] sm:$0xff] }
 0x18e   : > { %v552_v29 = vpop.xlane.xlu0 %551 }
 0x18f   : > { %v553_v30 = vsub.f32 %v548_v18, %v552_v29  ;;  %v737_v18 = vld [vmem:[%s1884_s6 + $0xa0] sm:$0xff]  ;;  %v751_v29 = vld [vmem:[%s1884_s6 + $0x110] sm:$0xff] }
 0x191   : > { %v554_v31 = vmul.f32 1.442695, %v553_v30  ;;  %v734_v30 = vld [vmem:[%s1884_s6 + $0x88] sm:$0xff] }
 0x193   : > { %1234 = vpow2.f32 %v554_v31  ;;  %v766_v31 = vld [vmem:[%s1884_s6 + $0x188] sm:$0xff] }
 0x1a0   : > { %v1235_v32 = vpop.eup %1234 }
 0x1a1   : > { %1045 = vmatmul.mubr.msk.f32.vlgmr.msra.gmra.mxu0 %vm549_vm2, %v1235_v32  ;;  %1046 = vmatmul.mubr.msk.f32.vlgmr.msra.gmra.mxu1 %vm549_vm2, %v1235_v32  ;;  %v556_v33 = vsel %vm549_vm2, %v1235_v32, 0.0  ;;  %v718_v32 = vld [vmem:[%s1884_s6 + $0x8] sm:$0xff] }
 0x1a2   : > { %557 = vadd.xlane.f32.xlu1 %v556_v33  ;;  %1123 = vmatpush3.msra.mxu0 %v732_v36  ;;  %v750_v33 = vld [vmem:[%s1884_s6 + $0x108] sm:$0xff]  ;;  %v717_v36 = vld [vmem:[%s1884_s6] sm:$0xff] }
 0x1a3   : > { %1158 = vmatpush3.msra.mxu1 %v764_v37  ;;  %1124 = vmatprep.subr.mxu0 %v747_v38  ;;  %v749_v37 = vld [vmem:[%s1884_s6 + $0x100] sm:$0xff] }
 0x1a4   : > { %1159 = vmatprep.subr.mxu1 %v779_v39  ;;  %1125 = vmatpush3.msra.mxu0 %v731_v40 }
 0x1a5   : > { %1160 = vmatpush3.msra.mxu1 %v763_v41  ;;  %1126 = vmatprep.subr.mxu0 %v746_v42 }
 0x1a6   : > { %1161 = vmatprep.subr.mxu1 %v778_v43  ;;  %1127 = vmatpush3.msra.mxu0 %v730_v44 }
 0x1a7   : > { %1162 = vmatpush3.msra.mxu1 %v762_v45  ;;  %1128 = vmatprep.subr.mxu0 %v745_v46 }
 0x1a8   : > { %1163 = vmatprep.subr.mxu1 %v777_v47  ;;  %1129 = vmatpush3.msra.mxu0 %v729_v48 }
 0x1a9   : > { %1164 = vmatpush3.msra.mxu1 %v761_v49  ;;  %1130 = vmatprep.subr.mxu0 %v744_v50 }
 0x1aa   : > { %1165 = vmatprep.subr.mxu1 %v776_v51  ;;  %1131 = vmatpush3.msra.mxu0 %v728_v52  ;;  %v921_v51 = vld [vmem:[%s314_s17] sm:$0xff] }
 0x1ab   : > { %1166 = vmatpush3.msra.mxu1 %v760_v53  ;;  %1132 = vmatprep.subr.mxu0 %v743_v54 }
 0x1ac   : > { %1167 = vmatprep.subr.mxu1 %v775_v55  ;;  %1133 = vmatpush3.msra.mxu0 %v727_v56 }
 0x1ad   : > { %1168 = vmatpush3.msra.mxu1 %v759_v57  ;;  %1134 = vmatprep.subr.mxu0 %v742_v58 }
 0x1ae   : > { %1169 = vmatprep.subr.mxu1 %v774_v59  ;;  %1135 = vmatpush3.msra.mxu0 %v726_v60 }
 0x1af   : > { %1170 = vmatpush3.msra.mxu1 %v758_v61  ;;  %1136 = vmatprep.subr.mxu0 %v741_v62 }
 0x1b0   : > { %1171 = vmatprep.subr.mxu1 %v773_v0  ;;  %1137 = vmatpush3.msra.mxu0 %v725_v4 }
 0x1b1   : > { %1172 = vmatpush3.msra.mxu1 %v757_v5  ;;  %1138 = vmatprep.subr.mxu0 %v740_v6 }
 0x1b2   : > { %1173 = vmatprep.subr.mxu1 %v772_v7  ;;  %1139 = vmatpush3.msra.mxu0 %v724_v8 }
 0x1b3   : > { %1174 = vmatpush3.msra.mxu1 %v756_v9  ;;  %1140 = vmatprep.subr.mxu0 %v739_v10 }
 0x1b4   : > { %1175 = vmatprep.subr.mxu1 %v771_v11  ;;  %1141 = vmatpush3.msra.mxu0 %v723_v12 }
 0x1b5   : > { %1176 = vmatpush3.msra.mxu1 %v755_v13  ;;  %1142 = vmatprep.subr.mxu0 %v738_v14 }
 0x1b6   : > { %1177 = vmatprep.subr.mxu1 %v770_v15  ;;  %1143 = vmatpush3.msra.mxu0 %v722_v16 }
 0x1b7   : > { %1178 = vmatpush3.msra.mxu1 %v754_v17  ;;  %1144 = vmatprep.subr.mxu0 %v737_v18 }
 0x1b8   : > { %1179 = vmatprep.subr.mxu1 %v769_v19  ;;  %1145 = vmatpush3.msra.mxu0 %v721_v20 }
 0x1b9   : > { %1180 = vmatpush3.msra.mxu1 %v753_v21  ;;  %1146 = vmatprep.subr.mxu0 %v736_v22 }
 0x1ba   : > { %1181 = vmatprep.subr.mxu1 %v768_v23  ;;  %1147 = vmatpush3.msra.mxu0 %v720_v24 }
 0x1bb   : > { %1182 = vmatpush3.msra.mxu1 %v752_v25  ;;  %1148 = vmatprep.subr.mxu0 %v735_v26 }
 0x1bc   : > { %1183 = vmatprep.subr.mxu1 %v767_v27  ;;  %1149 = vmatpush3.msra.mxu0 %v719_v28 }
 0x1bd   : > { %1184 = vmatpush3.msra.mxu1 %v751_v29  ;;  %1150 = vmatprep.subr.mxu0 %v734_v30 }
 0x1be   : > { %1185 = vmatprep.subr.mxu1 %v766_v31  ;;  %1151 = vmatpush3.msra.mxu0 %v718_v32 }
 0x1bf   : > { %1186 = vmatpush3.msra.mxu1 %v750_v33  ;;  %1152 = vmatprep.subr.mxu0 %v733_v34 }
 0x1c0   : > { %1187 = vmatprep.subr.mxu1 %v765_v35  ;;  %1153 = vmatpush3.msra.mxu0 %v717_v36 }
 0x1c1   : > { %1188 = vmatpush3.msra.mxu1 %v749_v37 }
 0x22b   : > { %v558_v46 = vpop.xlane.xlu1 %557 }
 0x22c   : > { %1236 = vrcp.f32 %v558_v46 }
 0x239   : > { %v1237_v50 = vpop.eup %1236 }
 0x261   : > { %v637_v38 = vpop.f32.mrf.mxu0  ;;  %v708_v39 = vpop.f32.mrf.mxu1 }
 0x262   : > { %v713_v44 = vmul.f32 %v637_v38, %v1604_v2  ;;  %v715_v45 = vmul.f32 %v708_v39, %v1606_v3 }
 0x263   : > { %v639_v40 = vpop.f32.mrf.mxu0  ;;  %v710_v41 = vpop.f32.mrf.mxu1 }
 0x264   : > { %v714_v42 = vmul.f32 %v639_v40, %v1593_v63  ;;  %v716_v43 = vmul.f32 %v710_v41, %v1598_v1 }
 0x266   : > { %845 = vmatprep.mubr.f32.mxu0 %v714_v42  ;;  %915 = vmatprep.mubr.f32.mxu1 %v716_v43 }
 0x267   : > { %846 = vmatmul.mubr.f32.vlgmr.msra.gmra.mxu0 %v713_v44  ;;  %916 = vmatmul.mubr.f32.vlgmr.msra.gmra.mxu1 %v715_v45 }
 0x327   : > { %v1154_v47 = vpop.f32.mrf.mxu0  ;;  %v1189_v48 = vpop.f32.mrf.mxu1 }
 0x329   : > { %v1155_v49 = vpop.f32.mrf.mxu0  ;;  %v1190_v63 = vpop.f32.mrf.mxu1 }
 0x32a   : > { %v1156_v1 = vadd.f32 %v1155_v49, %v1154_v47  ;;  %v1191_v2 = vadd.f32 %v1190_v63, %v1189_v48 }
 0x32c   : > { %v918_v3 = vadd.f32 %v1191_v2, %v1156_v1 }
 0x32e   : > { %v922_v52 = vmul.f32 %v1237_v50, %v918_v3 }
 0x330   : > { %v923_v53 = vadd.f32 %v922_v52, %v921_v51 }
 0x332   : > { %925 = vst.msk [vmem:[%s310_s8] sm:$0xff] %vm924_vm3, %v923_v53 }
 0x333   : > { %1251 = shalt.err (!%p1248_p3)
}
 0x334   : > { %s1252_s19 = scalar_lea.hbm %s938_s14, 128  ;;  %s1256_s17 = scalar_lea.hbm %s1885_s7, 384 }
 0x335   : > { %p1253_p4 = scmp.ne.s32.totalorder %s938_s14, %s1252_s19  ;;  %p1257_p9 = scmp.lt.s32.totalorder %s938_s14, %s1885_s7 }
 0x336   : > { %p1258_p10 = scmp.lt.s32.totalorder %s1256_s17, %s1252_s19 }
 0x337   : > { %p1254_p7 = pnand %p1253_p4, %p1381_p5 }
 0x338   : > { %p1259_p11 = por %p1258_p10, %p1257_p9 }
 0x339   : > { %p1255_p8 = pneg %p1254_p7 }
 0x33b   : > { %p1260_p12 = pnand %p1259_p11, %p1255_p8 }
 0x33d   : > { %1263 = shalt.err (!%p1260_p12)
}
 0x33e   : > { %1192 = dma.vmem_to_hbm [thread:$0]  (%p1381_p5), %s941_s9, 128, %s938_s14, %s927_s16  }
 0x33f PF: > { %p1198_p13 = scmp.ge.s32.totalorder %s1298_s27, 2  ;;  %s952_s13 = sand.u32 1, %s1286_s24  }
 0x340   : > { %s953_s29 = scalar_lea.sflag [#allocation3], %s952_s13 }
 0x341   : > { %p1195_p0 = pnand %p1198_p13, %p1385_p6 }
 0x343   : > { %p1196_p1 = pneg %p1195_p0 }
 0x345   : > { %1281 = dma.done.wait (%p1196_p1), %s953_s29, 128  }
 0x346   : > { %1283 = vsyncadd (%p1196_p1), %s953_s29, 4294967168  ;;  %p17_p2 = scmp.ge.s32.totalorder %s1368_s30, 5   ;;  %s1888_s24 = smov %s1290_s25 }
 0x347   : > { %s1889_s25 = smov %s1294_s26  ;;  %s1890_s26 = smov %s1379_s10 }
 0x348   : > { %s1891_s27 = smov %s1368_s30  ;;  %19 = sbr.rel (!%p17_p2) target bundleno = 3 (0x3), region = 92 }
 0x34d   :  { %958 = vsyncpa [#allocation3], 1 }
 0x34e   :  { %960 = vsyncpa [#allocation3 + $0x1], 1 }

</bundles_post_ra>
